<compile_context>
chip_gen: v5e
topology: v5e:2x2
jax: 0.10.0
libtpu: 0.0.40
codegen_flags: <defaults>
</compile_context>

<pallas_src>
import jax
import jax.numpy as jnp
from jax.experimental import pallas as pl
from jax.experimental.pallas import tpu as pltpu

_LN_EPS = 1e-6


def _round_up(x, m):
    return ((x + m - 1) // m) * m


def _make_fused_kernel(n_layers):
    """Build a kernel that runs all `n_layers` FF stages on one row tile."""

    def kernel(*refs):
        x_ref = refs[0]
        o_ref = refs[-1]
        param_refs = refs[1:-1]  # (w, b, gamma, beta) * n_layers

        h = x_ref[...].astype(jnp.float32)  # (tile_m, n_in0)
        for layer in range(n_layers):
            w_ref, b_ref, g_ref, beta_ref = param_refs[4 * layer: 4 * layer + 4]
            w = w_ref[...].astype(jnp.float32)       # (n_in, n_out), resident
            b = b_ref[...]                           # (1, n_out)
            g = g_ref[...]                           # (1, n_out)
            beta = beta_ref[...]                     # (1, n_out)

            # Linear (MXU) + bias
            y = jnp.dot(h, w, preferred_element_type=jnp.float32) + b

            # TODO(synk): nn.Dropout(p) is stochastic in train mode; inference
            # forward is the identity, which is what we implement here.

            # slp LayerNorm: gamma * (y - mean) / (std + eps) + beta
            # (unbiased std over the last dim).
            n_out = y.shape[-1]
            mean = jnp.mean(y, axis=-1, keepdims=True)
            centered = y - mean
            var = jnp.sum(centered * centered, axis=-1, keepdims=True) / (n_out - 1)
            std = jnp.sqrt(var)
            inv = pl.reciprocal(std + _LN_EPS, approx=True)   # EUP, not VPU
            y = g * (centered * inv) + beta

            # ReLU
            h = jnp.maximum(y, 0.0)

        o_ref[...] = h.astype(o_ref.dtype)

    return kernel


def multilayer_ff(x, params, *, tile_m_cap=512):
    """Fused forward pass: x (..., input_dim) -> (..., output_dim)."""
    n_in0 = params[0][0].shape[0]
    out_dim = params[-1][0].shape[1]
    lead_shape = x.shape[:-1]

    x2 = x.reshape(-1, n_in0).astype(jnp.float32)
    M = x2.shape[0]

    dims = [n_in0] + [w.shape[1] for (w, _, _, _) in params]
    for d in dims[1:]:
        # Unbiased variance divides by (n_out - 1).
        assert d > 1, "slp LayerNorm (unbiased std) requires n_out > 1"
    max_feat = max(dims)

    # Large row tile (pipeline overhead amortization); pad batch to tile.
    tile_m = min(tile_m_cap, _round_up(M, 8))
    m_pad = _round_up(M, tile_m)
    if m_pad != M:
        x2 = jnp.pad(x2, ((0, m_pad - M), (0, 0)))
    grid = (m_pad // tile_m,)

    # Inputs: x row-tile, then resident (W, b, gamma, beta) per layer.
    in_specs = [pl.BlockSpec((tile_m, dims[0]), lambda i: (i, 0))]
    flat_args = [x2]
    for (w, b, g, be) in params:
        nin, nout = w.shape
        in_specs += [
            pl.BlockSpec((nin, nout), lambda i: (0, 0)),   # W (full, resident)
            pl.BlockSpec((1, nout), lambda i: (0, 0)),     # bias
            pl.BlockSpec((1, nout), lambda i: (0, 0)),     # gamma
            pl.BlockSpec((1, nout), lambda i: (0, 0)),     # beta
        ]
        flat_args += [w, b.reshape(1, nout), g.reshape(1, nout), be.reshape(1, nout)]

    # Explicit VMEM budget: double-buffered x/out streams + resident params
    # + intermediate headroom.  Clamped to fit v7x's 64 MiB physical VMEM.
    est = 2 * tile_m * dims[0] * 4 + 2 * tile_m * out_dim * 4
    est += sum(2 * (w.size + 3 * w.shape[1]) * 4 for (w, _, _, _) in params)
    est += 6 * tile_m * max_feat * 4
    vmem_limit = int(min(64 << 20, max(32 << 20, 2 * est)))

    out = pl.pallas_call(
        _make_fused_kernel(len(params)),
        out_shape=jax.ShapeDtypeStruct((m_pad, out_dim), jnp.float32),
        grid=grid,
        in_specs=in_specs,
        out_specs=pl.BlockSpec((tile_m, out_dim), lambda i: (i, 0)),
        compiler_params=pltpu.CompilerParams(
            dimension_semantics=("parallel",),
            vmem_limit_bytes=vmem_limit,
        ),
    )(*flat_args)

    out = out[:M]
    return out.reshape(lead_shape + (out_dim,))


multilayer_ff_forward = jax.jit(multilayer_ff)


def init_multilayer_ff_params(key, input_dim, output_dim, sizes, n_layers=1):
    """Deterministic parameter init matching MultilayerFF.__init__ shapes."""
    if isinstance(sizes, int):
        sizes = [sizes] * n_layers
    dims = [input_dim] + list(sizes) + [output_dim]
    params = []
    for nin, nout in zip(dims[:-1], dims[1:]):
        key, kw, kb = jax.random.split(key, 3)
        bound = 1.0 / (nin ** 0.5)
        w = jax.random.uniform(kw, (nin, nout), jnp.float32, -bound, bound)  # W^T
        b = jax.random.uniform(kb, (nout,), jnp.float32, -bound, bound)
        gamma = jnp.ones((nout,), jnp.float32)
        beta = jnp.zeros((nout,), jnp.float32)
        params.append((w, b, gamma, beta))
    return params


def _ref_forward(x, params):
    """Pure-JAX reference (same math, no Pallas) for a correctness check."""
    h = x.astype(jnp.float32)
    for (w, b, g, be) in params:
        y = h @ w + b
        mean = jnp.mean(y, axis=-1, keepdims=True)
        c = y - mean
        var = jnp.sum(c * c, axis=-1, keepdims=True) / (y.shape[-1] - 1)
        y = g * c / (jnp.sqrt(var) + _LN_EPS) + be
        h = jnp.maximum(y, 0.0)
    return h


if __name__ == "__main__":
    key = jax.random.PRNGKey(0)
    k_x, k_p = jax.random.split(key)

    # MultilayerFF(input_dim=16, output_dim=16, sizes=32, n_layers=2)
    #   -> dims [16, 32, 32, 16] -> three fused FF layers.
    input_dim, output_dim, hidden, n_layers = 16, 16, 32, 2
    batch = 16

    x = jax.random.normal(k_x, (batch, input_dim), jnp.float32)
    params = init_multilayer_ff_params(k_p, input_dim, output_dim, hidden, n_layers)

    out = multilayer_ff_forward(x, params)
    out = jax.block_until_ready(out)

    assert out.shape == (batch, output_dim)
    assert bool(jnp.all(jnp.isfinite(out)))

    ref = _ref_forward(x, params)
    assert bool(jnp.allclose(out, ref, rtol=2e-2, atol=2e-2)), "mismatch vs reference"

    print("KERNEL_OK")
</pallas_src>

<mosaic_0001>
module attributes {stable_mosaic.version = 11 : i64} {
  func.func @kernel(%arg0: i32, %arg1: memref<16x16xf32, #tpu.memory_space<vmem>>, %arg2: memref<16x32xf32, #tpu.memory_space<vmem>>, %arg3: memref<1x32xf32, #tpu.memory_space<vmem>>, %arg4: memref<1x32xf32, #tpu.memory_space<vmem>>, %arg5: memref<1x32xf32, #tpu.memory_space<vmem>>, %arg6: memref<32x32xf32, #tpu.memory_space<vmem>>, %arg7: memref<1x32xf32, #tpu.memory_space<vmem>>, %arg8: memref<1x32xf32, #tpu.memory_space<vmem>>, %arg9: memref<1x32xf32, #tpu.memory_space<vmem>>, %arg10: memref<32x16xf32, #tpu.memory_space<vmem>>, %arg11: memref<1x16xf32, #tpu.memory_space<vmem>>, %arg12: memref<1x16xf32, #tpu.memory_space<vmem>>, %arg13: memref<1x16xf32, #tpu.memory_space<vmem>>, %arg14: memref<16x16xf32, #tpu.memory_space<vmem>>) attributes {dimension_semantics = [#tpu.dimension_semantics<parallel>], iteration_bounds = array<i64: 1>, scalar_prefetch = 0 : i64, scratch_operands = 0 : i64, tpu.core_type = #tpu.core_type<tc>, window_params = [{transform_indices = @transform_0, window_bounds = array<i64: 16, 16>}, {pipeline_mode = #tpu.pipeline_mode<synchronous>, transform_indices = @transform_1, window_bounds = array<i64: 16, 32>}, {pipeline_mode = #tpu.pipeline_mode<synchronous>, transform_indices = @transform_2, window_bounds = array<i64: 1, 32>}, {pipeline_mode = #tpu.pipeline_mode<synchronous>, transform_indices = @transform_3, window_bounds = array<i64: 1, 32>}, {pipeline_mode = #tpu.pipeline_mode<synchronous>, transform_indices = @transform_4, window_bounds = array<i64: 1, 32>}, {pipeline_mode = #tpu.pipeline_mode<synchronous>, transform_indices = @transform_5, window_bounds = array<i64: 32, 32>}, {pipeline_mode = #tpu.pipeline_mode<synchronous>, transform_indices = @transform_6, window_bounds = array<i64: 1, 32>}, {pipeline_mode = #tpu.pipeline_mode<synchronous>, transform_indices = @transform_7, window_bounds = array<i64: 1, 32>}, {pipeline_mode = #tpu.pipeline_mode<synchronous>, transform_indices = @transform_8, window_bounds = array<i64: 1, 32>}, {pipeline_mode = #tpu.pipeline_mode<synchronous>, transform_indices = @transform_9, window_bounds = array<i64: 32, 16>}, {pipeline_mode = #tpu.pipeline_mode<synchronous>, transform_indices = @transform_10, window_bounds = array<i64: 1, 16>}, {pipeline_mode = #tpu.pipeline_mode<synchronous>, transform_indices = @transform_11, window_bounds = array<i64: 1, 16>}, {pipeline_mode = #tpu.pipeline_mode<synchronous>, transform_indices = @transform_12, window_bounds = array<i64: 1, 16>}, {transform_indices = @transform_13, window_bounds = array<i64: 16, 16>}]} {
    %c0 = arith.constant 0 : index
    %c0_0 = arith.constant 0 : index
    %0 = vector.load %arg1[%c0, %c0_0] : memref<16x16xf32, #tpu.memory_space<vmem>>, vector<16x16xf32>
    %c0_1 = arith.constant 0 : index
    %c0_2 = arith.constant 0 : index
    %1 = vector.load %arg2[%c0_1, %c0_2] : memref<16x32xf32, #tpu.memory_space<vmem>>, vector<16x32xf32>
    %c0_3 = arith.constant 0 : index
    %c0_4 = arith.constant 0 : index
    %2 = vector.load %arg3[%c0_3, %c0_4] : memref<1x32xf32, #tpu.memory_space<vmem>>, vector<1x32xf32>
    %c0_5 = arith.constant 0 : index
    %c0_6 = arith.constant 0 : index
    %3 = vector.load %arg4[%c0_5, %c0_6] : memref<1x32xf32, #tpu.memory_space<vmem>>, vector<1x32xf32>
    %c0_7 = arith.constant 0 : index
    %c0_8 = arith.constant 0 : index
    %4 = vector.load %arg5[%c0_7, %c0_8] : memref<1x32xf32, #tpu.memory_space<vmem>>, vector<1x32xf32>
    %cst = arith.constant dense<0.000000e+00> : vector<16x32xf32>
    %5 = tpu.matmul %0, %1, %cst {dimension_numbers = #tpu.dot_dimension_numbers<[1], [0], [0], [1], [0, 0, 1, 1], [], []>} : vector<16x16xf32>, vector<16x32xf32>, vector<16x32xf32> -> vector<16x32xf32>
    %6 = vector.broadcast %2 : vector<1x32xf32> to vector<16x32xf32>
    %7 = arith.addf %5, %6 : vector<16x32xf32>
    %cst_9 = arith.constant dense<0.000000e+00> : vector<16xf32>
    %8 = vector.multi_reduction <add>, %7, %cst_9 [1] : vector<16x32xf32> to vector<16xf32>
    %9 = vector.shape_cast %8 : vector<16xf32> to vector<16x1xf32>
    %cst_10 = arith.constant 3.200000e+01 : f32
    %10 = vector.broadcast %cst_10 : f32 to vector<16x1xf32>
    %11 = arith.divf %9, %10 : vector<16x1xf32>
    %12 = vector.broadcast %11 : vector<16x1xf32> to vector<16x32xf32>
    %13 = arith.subf %7, %12 : vector<16x32xf32>
    %14 = arith.mulf %13, %13 : vector<16x32xf32>
    %cst_11 = arith.constant dense<0.000000e+00> : vector<16xf32>
    %15 = vector.multi_reduction <add>, %14, %cst_11 [1] : vector<16x32xf32> to vector<16xf32>
    %16 = vector.shape_cast %15 : vector<16xf32> to vector<16x1xf32>
    %cst_12 = arith.constant 3.100000e+01 : f32
    %17 = vector.broadcast %cst_12 : f32 to vector<16x1xf32>
    %18 = arith.divf %16, %17 : vector<16x1xf32>
    %19 = math.sqrt %18 : vector<16x1xf32>
    %cst_13 = arith.constant 9.99999997E-7 : f32
    %20 = vector.broadcast %cst_13 : f32 to vector<16x1xf32>
    %21 = arith.addf %19, %20 : vector<16x1xf32>
    %22 = tpu.reciprocal %21 {approx = true} : vector<16x1xf32> -> vector<16x1xf32>
    %23 = vector.broadcast %22 : vector<16x1xf32> to vector<16x32xf32>
    %24 = arith.mulf %13, %23 : vector<16x32xf32>
    %25 = vector.broadcast %3 : vector<1x32xf32> to vector<16x32xf32>
    %26 = arith.mulf %25, %24 : vector<16x32xf32>
    %27 = vector.broadcast %4 : vector<1x32xf32> to vector<16x32xf32>
    %28 = arith.addf %26, %27 : vector<16x32xf32>
    %cst_14 = arith.constant 0.000000e+00 : f32
    %29 = vector.broadcast %cst_14 : f32 to vector<16x32xf32>
    %30 = arith.maximumf %28, %29 : vector<16x32xf32>
    %c0_15 = arith.constant 0 : index
    %c0_16 = arith.constant 0 : index
    %31 = vector.load %arg6[%c0_15, %c0_16] : memref<32x32xf32, #tpu.memory_space<vmem>>, vector<32x32xf32>
    %c0_17 = arith.constant 0 : index
    %c0_18 = arith.constant 0 : index
    %32 = vector.load %arg7[%c0_17, %c0_18] : memref<1x32xf32, #tpu.memory_space<vmem>>, vector<1x32xf32>
    %c0_19 = arith.constant 0 : index
    %c0_20 = arith.constant 0 : index
    %33 = vector.load %arg8[%c0_19, %c0_20] : memref<1x32xf32, #tpu.memory_space<vmem>>, vector<1x32xf32>
    %c0_21 = arith.constant 0 : index
    %c0_22 = arith.constant 0 : index
    %34 = vector.load %arg9[%c0_21, %c0_22] : memref<1x32xf32, #tpu.memory_space<vmem>>, vector<1x32xf32>
    %cst_23 = arith.constant dense<0.000000e+00> : vector<16x32xf32>
    %35 = tpu.matmul %30, %31, %cst_23 {dimension_numbers = #tpu.dot_dimension_numbers<[1], [0], [0], [1], [0, 0, 1, 1], [], []>} : vector<16x32xf32>, vector<32x32xf32>, vector<16x32xf32> -> vector<16x32xf32>
    %36 = vector.broadcast %32 : vector<1x32xf32> to vector<16x32xf32>
    %37 = arith.addf %35, %36 : vector<16x32xf32>
    %cst_24 = arith.constant dense<0.000000e+00> : vector<16xf32>
    %38 = vector.multi_reduction <add>, %37, %cst_24 [1] : vector<16x32xf32> to vector<16xf32>
    %39 = vector.shape_cast %38 : vector<16xf32> to vector<16x1xf32>
    %cst_25 = arith.constant 3.200000e+01 : f32
    %40 = vector.broadcast %cst_25 : f32 to vector<16x1xf32>
    %41 = arith.divf %39, %40 : vector<16x1xf32>
    %42 = vector.broadcast %41 : vector<16x1xf32> to vector<16x32xf32>
    %43 = arith.subf %37, %42 : vector<16x32xf32>
    %44 = arith.mulf %43, %43 : vector<16x32xf32>
    %cst_26 = arith.constant dense<0.000000e+00> : vector<16xf32>
    %45 = vector.multi_reduction <add>, %44, %cst_26 [1] : vector<16x32xf32> to vector<16xf32>
    %46 = vector.shape_cast %45 : vector<16xf32> to vector<16x1xf32>
    %cst_27 = arith.constant 3.100000e+01 : f32
    %47 = vector.broadcast %cst_27 : f32 to vector<16x1xf32>
    %48 = arith.divf %46, %47 : vector<16x1xf32>
    %49 = math.sqrt %48 : vector<16x1xf32>
    %cst_28 = arith.constant 9.99999997E-7 : f32
    %50 = vector.broadcast %cst_28 : f32 to vector<16x1xf32>
    %51 = arith.addf %49, %50 : vector<16x1xf32>
    %52 = tpu.reciprocal %51 {approx = true} : vector<16x1xf32> -> vector<16x1xf32>
    %53 = vector.broadcast %52 : vector<16x1xf32> to vector<16x32xf32>
    %54 = arith.mulf %43, %53 : vector<16x32xf32>
    %55 = vector.broadcast %33 : vector<1x32xf32> to vector<16x32xf32>
    %56 = arith.mulf %55, %54 : vector<16x32xf32>
    %57 = vector.broadcast %34 : vector<1x32xf32> to vector<16x32xf32>
    %58 = arith.addf %56, %57 : vector<16x32xf32>
    %cst_29 = arith.constant 0.000000e+00 : f32
    %59 = vector.broadcast %cst_29 : f32 to vector<16x32xf32>
    %60 = arith.maximumf %58, %59 : vector<16x32xf32>
    %c0_30 = arith.constant 0 : index
    %c0_31 = arith.constant 0 : index
    %61 = vector.load %arg10[%c0_30, %c0_31] : memref<32x16xf32, #tpu.memory_space<vmem>>, vector<32x16xf32>
    %c0_32 = arith.constant 0 : index
    %c0_33 = arith.constant 0 : index
    %62 = vector.load %arg11[%c0_32, %c0_33] : memref<1x16xf32, #tpu.memory_space<vmem>>, vector<1x16xf32>
    %c0_34 = arith.constant 0 : index
    %c0_35 = arith.constant 0 : index
    %63 = vector.load %arg12[%c0_34, %c0_35] : memref<1x16xf32, #tpu.memory_space<vmem>>, vector<1x16xf32>
    %c0_36 = arith.constant 0 : index
    %c0_37 = arith.constant 0 : index
    %64 = vector.load %arg13[%c0_36, %c0_37] : memref<1x16xf32, #tpu.memory_space<vmem>>, vector<1x16xf32>
    %cst_38 = arith.constant dense<0.000000e+00> : vector<16x16xf32>
    %65 = tpu.matmul %60, %61, %cst_38 {dimension_numbers = #tpu.dot_dimension_numbers<[1], [0], [0], [1], [0, 0, 1, 1], [], []>} : vector<16x32xf32>, vector<32x16xf32>, vector<16x16xf32> -> vector<16x16xf32>
    %66 = vector.broadcast %62 : vector<1x16xf32> to vector<16x16xf32>
    %67 = arith.addf %65, %66 : vector<16x16xf32>
    %cst_39 = arith.constant dense<0.000000e+00> : vector<16xf32>
    %68 = vector.multi_reduction <add>, %67, %cst_39 [1] : vector<16x16xf32> to vector<16xf32>
    %69 = vector.shape_cast %68 : vector<16xf32> to vector<16x1xf32>
    %cst_40 = arith.constant 1.600000e+01 : f32
    %70 = vector.broadcast %cst_40 : f32 to vector<16x1xf32>
    %71 = arith.divf %69, %70 : vector<16x1xf32>
    %72 = vector.broadcast %71 : vector<16x1xf32> to vector<16x16xf32>
    %73 = arith.subf %67, %72 : vector<16x16xf32>
    %74 = arith.mulf %73, %73 : vector<16x16xf32>
    %cst_41 = arith.constant dense<0.000000e+00> : vector<16xf32>
    %75 = vector.multi_reduction <add>, %74, %cst_41 [1] : vector<16x16xf32> to vector<16xf32>
    %76 = vector.shape_cast %75 : vector<16xf32> to vector<16x1xf32>
    %cst_42 = arith.constant 1.500000e+01 : f32
    %77 = vector.broadcast %cst_42 : f32 to vector<16x1xf32>
    %78 = arith.divf %76, %77 : vector<16x1xf32>
    %79 = math.sqrt %78 : vector<16x1xf32>
    %cst_43 = arith.constant 9.99999997E-7 : f32
    %80 = vector.broadcast %cst_43 : f32 to vector<16x1xf32>
    %81 = arith.addf %79, %80 : vector<16x1xf32>
    %82 = tpu.reciprocal %81 {approx = true} : vector<16x1xf32> -> vector<16x1xf32>
    %83 = vector.broadcast %82 : vector<16x1xf32> to vector<16x16xf32>
    %84 = arith.mulf %73, %83 : vector<16x16xf32>
    %85 = vector.broadcast %63 : vector<1x16xf32> to vector<16x16xf32>
    %86 = arith.mulf %85, %84 : vector<16x16xf32>
    %87 = vector.broadcast %64 : vector<1x16xf32> to vector<16x16xf32>
    %88 = arith.addf %86, %87 : vector<16x16xf32>
    %cst_44 = arith.constant 0.000000e+00 : f32
    %89 = vector.broadcast %cst_44 : f32 to vector<16x16xf32>
    %90 = arith.maximumf %88, %89 : vector<16x16xf32>
    %c0_45 = arith.constant 0 : index
    %c0_46 = arith.constant 0 : index
    %91 = vector.load %arg14[%c0_45, %c0_46] : memref<16x16xf32, #tpu.memory_space<vmem>>, vector<16x16xf32>
    tpu.vector_store %arg14[%c0_45, %c0_46], %90 {strides = array<i32>} : memref<16x16xf32, #tpu.memory_space<vmem>>, vector<16x16xf32>,
    return
  }
  func.func @transform_0(%arg0: i32) -> (i32, i32) {
    %c0_i32 = arith.constant 0 : i32
    %c0_i32_0 = arith.constant 0 : i32
    return %arg0, %c0_i32 : i32, i32
  }
  func.func @transform_1(%arg0: i32) -> (i32, i32) {
    %c0_i32 = arith.constant 0 : i32
    %c0_i32_0 = arith.constant 0 : i32
    %c0_i32_1 = arith.constant 0 : i32
    return %c0_i32, %c0_i32_0 : i32, i32
  }
  func.func @transform_2(%arg0: i32) -> (i32, i32) {
    %c0_i32 = arith.constant 0 : i32
    %c0_i32_0 = arith.constant 0 : i32
    %c0_i32_1 = arith.constant 0 : i32
    return %c0_i32, %c0_i32_0 : i32, i32
  }
  func.func @transform_3(%arg0: i32) -> (i32, i32) {
    %c0_i32 = arith.constant 0 : i32
    %c0_i32_0 = arith.constant 0 : i32
    %c0_i32_1 = arith.constant 0 : i32
    return %c0_i32, %c0_i32_0 : i32, i32
  }
  func.func @transform_4(%arg0: i32) -> (i32, i32) {
    %c0_i32 = arith.constant 0 : i32
    %c0_i32_0 = arith.constant 0 : i32
    %c0_i32_1 = arith.constant 0 : i32
    return %c0_i32, %c0_i32_0 : i32, i32
  }
  func.func @transform_5(%arg0: i32) -> (i32, i32) {
    %c0_i32 = arith.constant 0 : i32
    %c0_i32_0 = arith.constant 0 : i32
    %c0_i32_1 = arith.constant 0 : i32
    return %c0_i32, %c0_i32_0 : i32, i32
  }
  func.func @transform_6(%arg0: i32) -> (i32, i32) {
    %c0_i32 = arith.constant 0 : i32
    %c0_i32_0 = arith.constant 0 : i32
    %c0_i32_1 = arith.constant 0 : i32
    return %c0_i32, %c0_i32_0 : i32, i32
  }
  func.func @transform_7(%arg0: i32) -> (i32, i32) {
    %c0_i32 = arith.constant 0 : i32
    %c0_i32_0 = arith.constant 0 : i32
    %c0_i32_1 = arith.constant 0 : i32
    return %c0_i32, %c0_i32_0 : i32, i32
  }
  func.func @transform_8(%arg0: i32) -> (i32, i32) {
    %c0_i32 = arith.constant 0 : i32
    %c0_i32_0 = arith.constant 0 : i32
    %c0_i32_1 = arith.constant 0 : i32
    return %c0_i32, %c0_i32_0 : i32, i32
  }
  func.func @transform_9(%arg0: i32) -> (i32, i32) {
    %c0_i32 = arith.constant 0 : i32
    %c0_i32_0 = arith.constant 0 : i32
    %c0_i32_1 = arith.constant 0 : i32
    return %c0_i32, %c0_i32_0 : i32, i32
  }
  func.func @transform_10(%arg0: i32) -> (i32, i32) {
    %c0_i32 = arith.constant 0 : i32
    %c0_i32_0 = arith.constant 0 : i32
    %c0_i32_1 = arith.constant 0 : i32
    return %c0_i32, %c0_i32_0 : i32, i32
  }
  func.func @transform_11(%arg0: i32) -> (i32, i32) {
    %c0_i32 = arith.constant 0 : i32
    %c0_i32_0 = arith.constant 0 : i32
    %c0_i32_1 = arith.constant 0 : i32
    return %c0_i32, %c0_i32_0 : i32, i32
  }
  func.func @transform_12(%arg0: i32) -> (i32, i32) {
    %c0_i32 = arith.constant 0 : i32
    %c0_i32_0 = arith.constant 0 : i32
    %c0_i32_1 = arith.constant 0 : i32
    return %c0_i32, %c0_i32_0 : i32, i32
  }
  func.func @transform_13(%arg0: i32) -> (i32, i32) {
    %c0_i32 = arith.constant 0 : i32
    %c0_i32_0 = arith.constant 0 : i32
    return %arg0, %c0_i32 : i32, i32
  }
}

</mosaic_0001>

<bundles_post_ra>
// kernel: multilayer_ff.1
= control target key start
LH: loop header
LB: loop body
LE: loop exit
PB: predicated region body
PF: predicated region fallthrough
CT: control target
= control target key end

     0   :  { %18 = vsyncpa [#allocation3], 0  ;;  %s922_s0 = inlined_call_operand.vmem [shape: f32[16,16], index: 0, kind: input, shape index: {}]   ;;  %s923_s1 = inlined_call_operand.hbm [shape: f32[16,32], index: 1, kind: input, shape index: {}]   ;;  %s924_s2 = inlined_call_operand.vmem [shape: f32[1,32], index: 2, kind: input, shape index: {}]   ;;  %s925_s3 = inlined_call_operand.hbm [shape: f32[1,32], index: 3, kind: input, shape index: {}]   ;;  %s926_s4 = inlined_call_operand.hbm [shape: f32[1,32], index: 4, kind: input, shape index: {}]   ;;  %s927_s5 = inlined_call_operand.vmem [shape: f32[32,32], index: 5, kind: input, shape index: {}]   ;;  %s928_s6 = inlined_call_operand.hbm [shape: f32[1,32], index: 6, kind: input, shape index: {}]   ;;  %s929_s7 = inlined_call_operand.hbm [shape: f32[1,32], index: 7, kind: input, shape index: {}]   ;;  %s930_s8 = inlined_call_operand.hbm [shape: f32[1,32], index: 8, kind: input, shape index: {}]   ;;  %s931_s9 = inlined_call_operand.vmem [shape: f32[32,16], index: 9, kind: input, shape index: {}]   ;;  %s932_s10 = inlined_call_operand.vmem [shape: f32[1,16], index: 10, kind: input, shape index: {}]   ;;  %s933_s11 = inlined_call_operand.vmem [shape: f32[1,16], index: 11, kind: input, shape index: {}]   ;;  %s934_s12 = inlined_call_operand.vmem [shape: f32[1,16], index: 12, kind: input, shape index: {}]   ;;  %s935_s13 = inlined_call_operand.hbm [shape: f32[16,16], index: 13, kind: output, shape index: {}]  }
   0x1   :  { %19 = vsyncpa [#allocation6], 0 }
   0x2   :  { %20 = vsyncpa [#allocation9], 0 }
   0x3   :  { %21 = vsyncpa [#allocation12], 0  ;;  %s45_s27 = sshll.u32 %s925_s3, 4  ;;  %s46_s27 = int_to_ptr.hbm [resolvable:$true] %s45_s27 }
   0x4   :  { %22 = vsyncpa [#allocation4], 0  ;;  %s728_s28 = smov [#allocation5]   ;;  %s69_s15 = sshll.u32 %s928_s6, 4  ;;  %s70_s15 = int_to_ptr.hbm [resolvable:$true] %s69_s15 }
   0x5   :  { %s47_s29 = sshll.u32 %s728_s28, 4  ;;  %s729_s16 = smov [#allocation8]   ;;  %s48_s29 = int_to_ptr.vmem [resolvable:$true] %s47_s29 }
   0x6   :  { %50 = dma.hbm_to_vmem [thread:$0]  %s46_s27, 16, %s48_s29, [#allocation6]  }
   0x7   :  { %s71_s17 = sshll.u32 %s729_s16, 4  ;;  %s29_s20 = sshll.u32 %s923_s1, 4  ;;  %s72_s17 = int_to_ptr.vmem [resolvable:$true] %s71_s17  ;;  %s30_s20 = int_to_ptr.hbm [resolvable:$true] %s29_s20 }
   0x8   :  { %74 = dma.hbm_to_vmem [thread:$0]  %s70_s15, 16, %s72_s17, [#allocation9]  }
   0x9   :  { %s730_s3 = smov [#allocation2]   ;;  %s56_s24 = sshll.u32 %s926_s4, 4  ;;  %s57_s24 = int_to_ptr.hbm [resolvable:$true] %s56_s24 }
   0xa   :  { %s31_s21 = sshll.u32 %s730_s3, 4  ;;  %s731_s25 = smov 128   ;;  %s32_s21 = int_to_ptr.vmem [resolvable:$true] %s31_s21 }
   0xb   :  { %s732_s6 = smov 8   ;;  %s733_s26 = smov [#allocation7]  }
   0xc   :  { %37 = dma.hbm_to_vmem [thread:$0]  %s30_s20, 256, %s32_s21, [#allocation3], %s731_s25, %s731_s25, %s732_s6  }
   0xd   :  { %s58_s27 = sshll.u32 %s733_s26, 4  ;;  %s80_s29 = sshll.u32 %s929_s7, 4  ;;  %s59_s27 = int_to_ptr.vmem [resolvable:$true] %s58_s27  ;;  %s81_s29 = int_to_ptr.hbm [resolvable:$true] %s80_s29 }
   0xe   :  { %61 = dma.hbm_to_vmem [thread:$0]  %s57_s24, 16, %s59_s27, [#allocation6]  }
   0xf   :  { %s91_s4 = sshll.u32 %s930_s8, 4  ;;  %s734_s15 = smov [#allocation10]   ;;  %s92_s4 = int_to_ptr.hbm [resolvable:$true] %s91_s4 }
  0x10   :  { %s82_s16 = sshll.u32 %s734_s15, 4  ;;  %s735_s17 = smov [#allocation11]   ;;  %s83_s16 = int_to_ptr.vmem [resolvable:$true] %s82_s16 }
  0x11   :  { %85 = dma.hbm_to_vmem [thread:$0]  %s81_s29, 16, %s83_s16, [#allocation9]  }
  0x12   :  { %s93_s18 = sshll.u32 %s735_s17, 4  ;;  %s94_s18 = int_to_ptr.vmem [resolvable:$true] %s93_s18 }
  0x13   :  { %96 = dma.hbm_to_vmem [thread:$0]  %s92_s4, 16, %s94_s18, [#allocation12]  }
  0x14   :  { %718 = dma.done.wait [#allocation3], 256  }
  0x15   :  { %719 = vsyncadd [#allocation3], 4294967040 }
  0x16   :  { %720 = dma.done.wait [#allocation6], 32  }
  0x17   :  { %721 = vsyncadd [#allocation6], 4294967264 }
  0x18   :  { %722 = dma.done.wait [#allocation9], 32  }
  0x19   :  { %723 = vsyncadd [#allocation9], 4294967264 }
  0x1a   :  { %724 = dma.done.wait [#allocation12], 16  }
  0x1b   :  { %725 = vsyncadd [#allocation12], 4294967280  ;;  %v132_v0 = vld [vmem:[#allocation2 + $0x8] sm:$0xff]  ;;  %v131_v1 = vld [vmem:[#allocation2] sm:$0xff]  ;;  %vm139_vm0 = vcmask 130048   ;;  %vm169_vm1 = vcmask 261120  }
  0x1c   :  { %160 = vmatpush.msra.mxu0 %v132_v0  ;;  %v129_v2 = vld [vmem:[%s922_s0] sm:$0xff]  ;;  %v130_v3 = vld [vmem:[%s922_s0 + $0x8] sm:$0xff]  ;;  %v736_v11 = vmov 32.0   ;;  %v737_v28 = vmov 31.0   ;;  %v249_v32 = vld [vmem:[%s927_s5 + $0x18] sm:$0xff]  ;;  %s470_s3 = sshll.u32 %s935_s13, 4  ;;  %s471_s3 = int_to_ptr.hbm [resolvable:$true] %s470_s3 }
  0x1d   :  { %v509_v4 = vld [vmem:[%s924_s2] ss:$0 sm:$0xff]  ;;  %518 = vrcp.f32 %v736_v11  ;;  %v248_v33 = vld [vmem:[%s927_s5 + $0x10] sm:$0xff]  ;;  %274 = vmatpush.msra.mxu1 %v249_v32  ;;  %492 = vmatpush.msra.mxu3 %v249_v32  ;;  %v247_v35 = vld [vmem:[%s927_s5 + $0x8] sm:$0xff] }
  0x1e   :  { %161 = vmatpush.msra.mxu0 %v131_v1  ;;  %520 = vrcp.f32 %v737_v28  ;;  %v246_v36 = vld [vmem:[%s927_s5] sm:$0xff]  ;;  %v510_v63 = vld [vmem:[#allocation5] ss:$0 sm:$0xff] }
  0x1f   :  { %486 = vmatmul.msk.f32.vlgmr.msra.gmra.mxu0 %vm139_vm0, %v129_v2  ;;  %275 = vmatpush.msra.mxu1 %v248_v33  ;;  %v349_v32 = vld [vmem:[%s931_s9 + $0x10] sm:$0xff] }
  0x20   :  { %493 = vmatpush.msra.mxu3 %v248_v33  ;;  %v348_v33 = vld [vmem:[%s931_s9 + $0x8] sm:$0xff] }
  0x21   :  { %276 = vmatpush.msra.mxu1 %v247_v35 }
  0x22   :  { %494 = vmatpush.msra.mxu3 %v247_v35 }
  0x23   :  { %v519_v12 = vpop.eup %518  ;;  %277 = vmatpush.msra.mxu1 %v246_v36 }
  0x24   :  { %v177_v13 = vmul.f32 32.0, %v519_v12  ;;  %vm181_vm2 = vweird.f32 %v519_v12  ;;  %v521_v29 = vpop.eup %520  ;;  %495 = vmatpush.msra.mxu3 %v246_v36 }
  0x25   :  { %v196_v30 = vmul.f32 31.0, %v521_v29  ;;  %vm200_vm3 = vweird.f32 %v521_v29 }
  0x26   :  { %v178_v14 = vsub.f32 1.0, %v177_v13  ;;  %v512_v13 = vld [vmem:[#allocation8] ss:$0 sm:$0xff] }
  0x27   :  { %487 = vmatmul.msk.f32.gmra.mxu0 %vm139_vm0, %v130_v3  ;;  %v197_v31 = vsub.f32 1.0, %v196_v30 }
  0x28   :  { %v179_v15 = vmul.f32 %v519_v12, %v178_v14 }
  0x29   :  { %v198_v34 = vmul.f32 %v521_v29, %v197_v31  ;;  %v350_v31 = vld [vmem:[%s931_s9 + $0x18] sm:$0xff] }
  0x2a   :  { %v180_v16 = vadd.f32 %v519_v12, %v179_v15  ;;  %375 = vmatpush.msra.mxu2 %v350_v31 }
  0x2b   :  { %v199_v37 = vadd.f32 %v521_v29, %v198_v34 }
  0x2c   :  { %v845_v17 = vsel %vm181_vm2, %v519_v12, %v180_v16  ;;  %376 = vmatpush.msra.mxu2 %v349_v32 }
  0x2d   :  { %v871_v38 = vsel %vm200_vm3, %v521_v29, %v199_v37 }
  0x2e   :  { %377 = vmatpush.msra.mxu2 %v348_v33  ;;  %v739_v33 = vmov 15.0  }
  0x9c   :  { %v163_v5 = vpop.f32.mrf.mxu0 }
  0x9d   :  { %v164_v6 = vadd.f32 %v509_v4, %v163_v5 }
  0x9f   :  { %v170_v7 = vsel %vm169_vm1, %v164_v6, 0.0 }
  0xa0   :  { %171 = vadd.xlane.f32.xlu0 %v170_v7 }
  0xa4   :  { %v166_v8 = vpop.f32.mrf.mxu0 }
  0xa5   :  { %v167_v9 = vadd.f32 %v509_v4, %v166_v8  ;;  %v511_v4 = vld [vmem:[#allocation7] ss:$0 sm:$0xff] }
  0xa7   :  { %v173_v10 = vsel %vm169_vm1, %v167_v9, 0.0 }
  0xa8   :  { %174 = vadd.xlane.f32.xlu0 %v173_v10 }
 0x113   :  { %v172_v18 = vpop.xlane.xlu0 %171 }
 0x114   :  { %v183_v19 = vmul.f32 %v845_v17, %v172_v18 }
 0x116   :  { %v848_v20 = vsub.f32 %v164_v6, %v183_v19 }
 0x118   :  { %v187_v21 = vmul.f32 %v848_v20, %v848_v20 }
 0x11a   :  { %v189_v22 = vsel %vm169_vm1, %v187_v21, 0.0 }
 0x11b   :  { %190 = vadd.xlane.f32.xlu1 %v189_v22  ;;  %v175_v23 = vpop.xlane.xlu0 %174 }
 0x11c   :  { %v184_v24 = vmul.f32 %v845_v17, %v175_v23 }
 0x11e   :  { %v854_v25 = vsub.f32 %v167_v9, %v184_v24 }
 0x120   :  { %v188_v26 = vmul.f32 %v854_v25, %v854_v25 }
 0x122   :  { %v192_v27 = vsel %vm169_vm1, %v188_v26, 0.0 }
 0x123   :  { %193 = vadd.xlane.f32.xlu1 %v192_v27 }
 0x18e   :  { %v191_v39 = vpop.xlane.xlu1 %190 }
 0x18f   :  { %v202_v40 = vmul.f32 %v871_v38, %v191_v39 }
 0x191   :  { %522 = vrsqrt.f32 %v202_v40  ;;  %vm211_vm4 = vcmp.eq.f32.partialorder %v202_v40, inf  ;;  %v214_v53 = vand.u32 2147483648, %v202_v40  ;;  %vm213_vm5 = vcmp.eq.f32.partialorder %v202_v40, 0.0 }
 0x196   :  { %v194_v41 = vpop.xlane.xlu1 %193 }
 0x197   :  { %v523_v42 = vpop.eup %522  ;;  %v203_v43 = vmul.f32 %v871_v38, %v194_v41 }
 0x198   :  { %v205_v44 = vmul.f32 %v523_v42, %v202_v40 }
 0x199   :  { %524 = vrsqrt.f32 %v203_v43  ;;  %vm223_vm6 = vcmp.eq.f32.partialorder %v203_v43, inf  ;;  %v226_v61 = vand.u32 2147483648, %v203_v43  ;;  %vm225_vm7 = vcmp.eq.f32.partialorder %v203_v43, 0.0 }
 0x19a   :  { %v206_v45 = vmul.f32 %v523_v42, %v205_v44 }
 0x19c   :  { %v207_v46 = vmul.f32 0.5, %v206_v45 }
 0x19e   :  { %v208_v47 = vsub.f32 1.5, %v207_v46 }
 0x19f   :  { %v525_v48 = vpop.eup %524 }
 0x1a0   :  { %v217_v49 = vmul.f32 %v525_v48, %v203_v43  ;;  %v209_v50 = vmul.f32 %v523_v42, %v208_v47 }
 0x1a2   :  { %v218_v51 = vmul.f32 %v525_v48, %v217_v49  ;;  %v210_v52 = vmul.f32 %v209_v50, %v202_v40 }
 0x1a4   :  { %v212_v54 = vsel %vm211_vm4, %v202_v40, %v210_v52  ;;  %v219_v55 = vmul.f32 0.5, %v218_v51 }
 0x1a5   :  { %v215_v56 = vsel %vm213_vm5, %v214_v53, %v212_v54 }
 0x1a6   :  { %v228_v57 = vadd.f32 1e-06, %v215_v56  ;;  %v220_v58 = vsub.f32 1.5, %v219_v55  ;;  %v513_v55 = vld [vmem:[#allocation10] ss:$0 sm:$0xff] }
 0x1a8   :  { %526 = vrcp.f32 %v228_v57  ;;  %v221_v59 = vmul.f32 %v525_v48, %v220_v58  ;;  %v514_v58 = vld [vmem:[#allocation11] ss:$0 sm:$0xff] }
 0x1aa   :  { %v222_v60 = vmul.f32 %v221_v59, %v203_v43 }
 0x1ac   :  { %v224_v62 = vsel %vm223_vm6, %v203_v43, %v222_v60 }
 0x1ad   :  { %v227_v0 = vsel %vm225_vm7, %v226_v61, %v224_v62 }
 0x1ae   :  { %v527_v1 = vpop.eup %526  ;;  %v229_v2 = vadd.f32 1e-06, %v227_v0 }
 0x1af   :  { %v232_v3 = vmul.f32 %v527_v1, %v848_v20 }
 0x1b0   :  { %528 = vrcp.f32 %v229_v2 }
 0x1b1   :  { %v237_v5 = vmul.f32 %v510_v63, %v232_v3 }
 0x1b3   :  { %v242_v6 = vadd.f32 %v511_v4, %v237_v5 }
 0x1b5   :  { %v244_v7 = vmax.f32 %v242_v6, 0.0 }
 0x1b6   :  { %v529_v8 = vpop.eup %528 }
 0x1b7   :  { %488 = vmatmul.msk.f32.vlgmr.msra.gmra.mxu1 %vm169_vm1, %v244_v7  ;;  %v233_v9 = vmul.f32 %v529_v8, %v854_v25  ;;  %v515_v8 = vld [vmem:[%s932_s10] ss:$0 sm:$0xff] }
 0x1b9   :  { %v238_v10 = vmul.f32 %v510_v63, %v233_v9 }
 0x1bb   :  { %v243_v11 = vadd.f32 %v511_v4, %v238_v10 }
 0x1bd   :  { %v245_v12 = vmax.f32 %v243_v11, 0.0 }
 0x1bf   :  { %489 = vmatmul.msk.f32.vlgmr.msra.gmra.mxu3 %vm169_vm1, %v245_v12 }
 0x234   :  { %v279_v14 = vpop.f32.mrf.mxu1 }
 0x235   :  { %v280_v15 = vadd.f32 %v512_v13, %v279_v14 }
 0x237   :  { %v285_v16 = vsel %vm169_vm1, %v280_v15, 0.0 }
 0x238   :  { %286 = vadd.xlane.f32.xlu2 %v285_v16 }
 0x242   :  { %v282_v18 = vpop.f32.mrf.mxu3 }
 0x243   :  { %v283_v19 = vadd.f32 %v512_v13, %v282_v18 }
 0x245   :  { %v288_v20 = vsel %vm169_vm1, %v283_v19, 0.0 }
 0x246   :  { %289 = vadd.xlane.f32.xlu2 %v288_v20 }
 0x2ab   :  { %v287_v21 = vpop.xlane.xlu2 %286 }
 0x2ac   :  { %v291_v22 = vmul.f32 %v287_v21, %v845_v17 }
 0x2ae   :  { %v293_v23 = vsub.f32 %v280_v15, %v291_v22  ;;  %v738_v15 = vmov 16.0  }
 0x2b0   :  { %v295_v24 = vmul.f32 %v293_v23, %v293_v23 }
 0x2b2   :  { %v297_v25 = vsel %vm169_vm1, %v295_v24, 0.0 }
 0x2b3   :  { %298 = vadd.xlane.f32.xlu0 %v297_v25 }
 0x2b9   :  { %v290_v26 = vpop.xlane.xlu2 %289 }
 0x2ba   :  { %v292_v27 = vmul.f32 %v290_v26, %v845_v17  ;;  %v347_v17 = vld [vmem:[%s931_s9] sm:$0xff] }
 0x2bb   :  { %378 = vmatpush.msra.mxu2 %v347_v17 }
 0x2bc   :  { %v294_v28 = vsub.f32 %v283_v19, %v292_v27 }
 0x2be   :  { %v296_v29 = vmul.f32 %v294_v28, %v294_v28 }
 0x2c0   :  { %v300_v30 = vsel %vm169_vm1, %v296_v29, 0.0 }
 0x2c1   :  { %301 = vadd.xlane.f32.xlu1 %v300_v30 }
 0x326   :  { %v299_v34 = vpop.xlane.xlu0 %298 }
 0x327   :  { %v303_v35 = vmul.f32 %v299_v34, %v871_v38 }
 0x329   :  { %530 = vrsqrt.f32 %v303_v35  ;;  %vm312_vm8 = vcmp.eq.f32.partialorder %v303_v35, inf  ;;  %v315_v46 = vand.u32 2147483648, %v303_v35  ;;  %vm314_vm9 = vcmp.eq.f32.partialorder %v303_v35, 0.0 }
 0x32f   :  { %v531_v36 = vpop.eup %530 }
 0x330   :  { %v306_v37 = vmul.f32 %v531_v36, %v303_v35 }
 0x332   :  { %v307_v39 = vmul.f32 %v531_v36, %v306_v37 }
 0x334   :  { %v302_v40 = vpop.xlane.xlu1 %301  ;;  %v308_v41 = vmul.f32 0.5, %v307_v39 }
 0x335   :  { %v304_v42 = vmul.f32 %v302_v40, %v871_v38 }
 0x336   :  { %v309_v43 = vsub.f32 1.5, %v308_v41 }
 0x337   :  { %532 = vrsqrt.f32 %v304_v42  ;;  %vm324_vm10 = vcmp.eq.f32.partialorder %v304_v42, inf  ;;  %v327_v61 = vand.u32 2147483648, %v304_v42  ;;  %vm326_vm11 = vcmp.eq.f32.partialorder %v304_v42, 0.0 }
 0x338   :  { %v310_v44 = vmul.f32 %v531_v36, %v309_v43 }
 0x33a   :  { %v311_v45 = vmul.f32 %v310_v44, %v303_v35 }
 0x33c   :  { %v313_v47 = vsel %vm312_vm8, %v303_v35, %v311_v45 }
 0x33d   :  { %v533_v48 = vpop.eup %532  ;;  %v316_v49 = vsel %vm314_vm9, %v315_v46, %v313_v47 }
 0x33e   :  { %v318_v50 = vmul.f32 %v533_v48, %v304_v42  ;;  %v329_v51 = vadd.f32 1e-06, %v316_v49 }
 0x340   :  { %v319_v52 = vmul.f32 %v533_v48, %v318_v50  ;;  %534 = vrcp.f32 %v329_v51 }
 0x342   :  { %v320_v53 = vmul.f32 0.5, %v319_v52 }
 0x344   :  { %v321_v54 = vsub.f32 1.5, %v320_v53 }
 0x346   :  { %v535_v56 = vpop.eup %534  ;;  %v322_v57 = vmul.f32 %v533_v48, %v321_v54 }
 0x347   :  { %v333_v38 = vmul.f32 %v535_v56, %v293_v23 }
 0x348   :  { %v323_v59 = vmul.f32 %v322_v57, %v304_v42 }
 0x349   :  { %v338_v60 = vmul.f32 %v513_v55, %v333_v38 }
 0x34a   :  { %v325_v62 = vsel %vm324_vm10, %v304_v42, %v323_v59  ;;  %v516_v59 = vld [vmem:[%s933_s11] ss:$0 sm:$0xff]  ;;  %s740_s11 = smov [#allocation13]  }
 0x34b   :  { %v343_v63 = vadd.f32 %v514_v58, %v338_v60  ;;  %v328_v0 = vsel %vm326_vm11, %v327_v61, %v325_v62  ;;  %s468_s19 = sshll.u32 %s740_s11, 4  ;;  %s469_s19 = int_to_ptr.vmem [resolvable:$true] %s468_s19 }
 0x34c   :  { %v330_v1 = vadd.f32 1e-06, %v328_v0 }
 0x34d   :  { %v345_v2 = vmax.f32 %v343_v63, 0.0  ;;  %v517_v63 = vld [vmem:[%s934_s12] ss:$0 sm:$0xff] }
 0x34e   :  { %536 = vrcp.f32 %v330_v1 }
 0x34f   :  { %490 = vmatmul.msk.f32.vlgmr.msra.gmra.mxu2 %vm169_vm1, %v345_v2  ;;  %538 = vrcp.f32 %v738_v15 }
 0x350   :  { %540 = vrcp.f32 %v739_v33 }
 0x354   :  { %v537_v3 = vpop.eup %536 }
 0x355   :  { %v334_v4 = vmul.f32 %v537_v3, %v294_v28  ;;  %v539_v16 = vpop.eup %538 }
 0x356   :  { %v393_v18 = vmul.f32 16.0, %v539_v16  ;;  %vm397_vm12 = vweird.f32 %v539_v16  ;;  %v541_v17 = vpop.eup %540 }
 0x357   :  { %v339_v5 = vmul.f32 %v513_v55, %v334_v4  ;;  %v412_v34 = vmul.f32 15.0, %v541_v17  ;;  %vm416_vm13 = vweird.f32 %v541_v17 }
 0x358   :  { %v394_v19 = vsub.f32 1.0, %v393_v18 }
 0x359   :  { %v344_v6 = vadd.f32 %v514_v58, %v339_v5  ;;  %v413_v35 = vsub.f32 1.0, %v412_v34 }
 0x35a   :  { %v395_v20 = vmul.f32 %v539_v16, %v394_v19 }
 0x35b   :  { %v346_v7 = vmax.f32 %v344_v6, 0.0  ;;  %v414_v36 = vmul.f32 %v541_v17, %v413_v35 }
 0x35c   :  { %v396_v21 = vadd.f32 %v539_v16, %v395_v20 }
 0x35d   :  { %491 = vmatmul.msk.f32.gmra.mxu2 %vm169_vm1, %v346_v7  ;;  %v415_v37 = vadd.f32 %v541_v17, %v414_v36 }
 0x35e   :  { %v398_v22 = vsel %vm397_vm12, %v539_v16, %v396_v21 }
 0x35f   :  { %v417_v39 = vsel %vm416_vm13, %v541_v17, %v415_v37 }
 0x3d2   :  { %v380_v9 = vpop.f32.mrf.mxu2 }
 0x3d3   :  { %v381_v10 = vadd.f32 %v515_v8, %v380_v9 }
 0x3d5   :  { %v386_v11 = vsel %vm139_vm0, %v381_v10, 0.0 }
 0x3d6   :  { %387 = vadd.xlane.f32.xlu2 %v386_v11 }
 0x3e0   :  { %v383_v12 = vpop.f32.mrf.mxu2 }
 0x3e1   :  { %v384_v13 = vadd.f32 %v515_v8, %v383_v12 }
 0x3e3   :  { %v389_v14 = vsel %vm139_vm0, %v384_v13, 0.0 }
 0x3e4   :  { %390 = vadd.xlane.f32.xlu0 %v389_v14 }
 0x449   :  { %v388_v23 = vpop.xlane.xlu2 %387 }
 0x44a   :  { %v399_v24 = vmul.f32 %v398_v22, %v388_v23 }
 0x44c   :  { %v401_v25 = vsub.f32 %v381_v10, %v399_v24 }
 0x44e   :  { %v403_v26 = vmul.f32 %v401_v25, %v401_v25 }
 0x450   :  { %v405_v27 = vsel %vm139_vm0, %v403_v26, 0.0 }
 0x451   :  { %406 = vadd.xlane.f32.xlu1 %v405_v27 }
 0x457   :  { %v391_v28 = vpop.xlane.xlu0 %390 }
 0x458   :  { %v400_v29 = vmul.f32 %v398_v22, %v391_v28 }
 0x45a   :  { %v402_v30 = vsub.f32 %v384_v13, %v400_v29 }
 0x45c   :  { %v404_v31 = vmul.f32 %v402_v30, %v402_v30 }
 0x45e   :  { %v408_v32 = vsel %vm139_vm0, %v404_v31, 0.0 }
 0x45f   :  { %409 = vadd.xlane.f32.xlu2 %v408_v32 }
 0x4c4   :  { %v407_v40 = vpop.xlane.xlu1 %406 }
 0x4c5   :  { %v418_v41 = vmul.f32 %v417_v39, %v407_v40 }
 0x4c7   :  { %542 = vrsqrt.f32 %v418_v41  ;;  %vm427_vm14 = vcmp.eq.f32.partialorder %v418_v41, inf  ;;  %v430_v51 = vand.u32 2147483648, %v418_v41  ;;  %vm429_vm15 = vcmp.eq.f32.partialorder %v418_v41, 0.0 }
 0x4cd   :  { %v543_v42 = vpop.eup %542 }
 0x4ce   :  { %v421_v43 = vmul.f32 %v543_v42, %v418_v41 }
 0x4d0   :  { %v422_v44 = vmul.f32 %v543_v42, %v421_v43 }
 0x4d2   :  { %v423_v45 = vmul.f32 0.5, %v422_v44  ;;  %v410_v46 = vpop.xlane.xlu2 %409 }
 0x4d3   :  { %v419_v47 = vmul.f32 %v417_v39, %v410_v46 }
 0x4d4   :  { %v424_v48 = vsub.f32 1.5, %v423_v45 }
 0x4d5   :  { %544 = vrsqrt.f32 %v419_v47  ;;  %vm439_vm1 = vcmp.eq.f32.partialorder %v419_v47, inf  ;;  %v442_v1 = vand.u32 2147483648, %v419_v47  ;;  %vm441_vm2 = vcmp.eq.f32.partialorder %v419_v47, 0.0 }
 0x4d6   :  { %v425_v49 = vmul.f32 %v543_v42, %v424_v48 }
 0x4d8   :  { %v426_v50 = vmul.f32 %v425_v49, %v418_v41 }
 0x4da   :  { %v428_v52 = vsel %vm427_vm14, %v418_v41, %v426_v50 }
 0x4db   :  { %v545_v53 = vpop.eup %544  ;;  %v431_v54 = vsel %vm429_vm15, %v430_v51, %v428_v52 }
 0x4dc   :  { %v433_v55 = vmul.f32 %v545_v53, %v419_v47  ;;  %v444_v56 = vadd.f32 1e-06, %v431_v54 }
 0x4de   :  { %v434_v57 = vmul.f32 %v545_v53, %v433_v55  ;;  %546 = vrcp.f32 %v444_v56 }
 0x4e0   :  { %v435_v38 = vmul.f32 0.5, %v434_v57 }
 0x4e2   :  { %v436_v58 = vsub.f32 1.5, %v435_v38 }
 0x4e4   :  { %v547_v60 = vpop.eup %546  ;;  %v437_v61 = vmul.f32 %v545_v53, %v436_v58 }
 0x4e5   :  { %v448_v62 = vmul.f32 %v547_v60, %v401_v25 }
 0x4e6   :  { %v438_v0 = vmul.f32 %v437_v61, %v419_v47 }
 0x4e7   :  { %v453_v2 = vmul.f32 %v516_v59, %v448_v62 }
 0x4e8   :  { %v440_v3 = vsel %vm439_vm1, %v419_v47, %v438_v0 }
 0x4e9   :  { %v443_v4 = vsel %vm441_vm2, %v442_v1, %v440_v3  ;;  %v458_v5 = vadd.f32 %v517_v63, %v453_v2 }
 0x4ea   :  { %v445_v6 = vadd.f32 1e-06, %v443_v4 }
 0x4eb   :  { %v460_v7 = vmax.f32 %v458_v5, 0.0 }
 0x4ec   :  { %548 = vrcp.f32 %v445_v6 }
 0x4ed   :  { %462 = vst.msk [vmem:[#allocation13] sm:$0xff] %vm139_vm0, %v460_v7 }
 0x4f2   :  { %v549_v8 = vpop.eup %548 }
 0x4f3   :  { %v449_v9 = vmul.f32 %v549_v8, %v402_v30 }
 0x4f5   :  { %v454_v10 = vmul.f32 %v516_v59, %v449_v9 }
 0x4f7   :  { %v459_v11 = vadd.f32 %v517_v63, %v454_v10 }
 0x4f9   :  { %v461_v12 = vmax.f32 %v459_v11, 0.0 }
 0x4fb   :  { %463 = vst.msk [vmem:[#allocation13 + $0x8] sm:$0xff] %vm139_vm0, %v461_v12 }
 0x4fc   :  { %476 = dma.vmem_to_hbm [thread:$0]  %s469_s19, 256, %s471_s3, [#allocation4], %s731_s25, %s731_s25, %s732_s6  }
 0x4fd   :  { %726 = dma.done.wait [#allocation4], 256  }
 0x4fe   :  { %727 = vsyncadd [#allocation4], 4294967040 }
 0x4ff   :  { %481 = vsyncpa [#allocation3], 1 }
 0x500   :  { %482 = vsyncpa [#allocation6], 1 }
 0x501   :  { %483 = vsyncpa [#allocation9], 1 }
 0x502   :  { %484 = vsyncpa [#allocation12], 1 }
 0x503   :  { %485 = vsyncpa [#allocation4], 1 }

</bundles_post_ra>
